<compile_context>
chip_gen: v7x
topology: tpu7x:2x2x1
jax: 0.10.0
libtpu: 0.0.40
codegen_flags: <defaults>
</compile_context>

<pallas_src>
import functools

import jax
import jax.numpy as jnp
from jax.experimental import pallas as pl
from jax.experimental.pallas import tpu as pltpu

LANE = 128  # TPU lane width


def _mlp_kernel(x_ref, w1_ref, b1_ref, w2_ref, b2_ref, o_ref):
    # x_ref : (TB, F)   batch tile of the input (streamed per grid step)
    # w1_ref: (F, H)    hidden weights, (in, out) orientation, VMEM-resident
    # b1_ref: (1, H)
    # w2_ref: (H, NP)   output weights, lane-padded to NP (multiple of 128) for MXU
    # b2_ref: (1, O)    narrow output bias
    # o_ref : (TB, O)   narrow output tile — only real outputs are written to HBM
    x = x_ref[...]
    num_features = x_ref.shape[1]
    n_out = o_ref.shape[1]

    # Layer 1: K = num_features is tiny -> VPU multiply-adds instead of an MXU
    # matmul (the Python loop is unrolled at trace time; fine for small F).
    h = x[:, 0:1] * w1_ref[0:1, :]
    for f in range(1, num_features):
        h = h + x[:, f:f + 1] * w1_ref[f:f + 1, :]
    h = jnp.maximum(h + b1_ref[...], 0.0)          # bias + ReLU on the VPU

    # Layer 2 on the MXU against the lane-padded RHS; narrow only the writeback.
    y = jnp.dot(h, w2_ref[...], preferred_element_type=jnp.float32)
    o_ref[...] = (y[:, :n_out] + b2_ref[...]).astype(o_ref.dtype)


def prepare_params(w1, b1, w2, b2):
    """One-time layout plumbing: PyTorch (out, in) -> matmul (in, out), plus
    lane-padding of the output projection weights (MXU RHS only).  Call once,
    reuse every forward."""
    n_hidden, n_feature = w1.shape
    n_output = w2.shape[0]
    n_pad = ((n_output + LANE - 1) // LANE) * LANE

    w1_t = jnp.asarray(w1, jnp.float32).T                       # (F, H)
    b1_r = jnp.asarray(b1, jnp.float32).reshape(1, n_hidden)    # (1, H)
    w2_pad = jnp.zeros((n_hidden, n_pad), jnp.float32)
    w2_pad = w2_pad.at[:, :n_output].set(jnp.asarray(w2, jnp.float32).T)
    b2_r = jnp.asarray(b2, jnp.float32).reshape(1, n_output)    # (1, O) narrow
    return w1_t, b1_r, w2_pad, b2_r


def net_forward(x, w1_t, b1_r, w2_pad, b2_r, *, block_b=1024):
    """x: (B, n_feature); prepared params from prepare_params().  Returns (B, n_output)."""
    B, F = x.shape
    H = w1_t.shape[1]
    NP = w2_pad.shape[1]
    O = b2_r.shape[1]

    # Batch tiling:
    #  * pad B only up to a sublane multiple (8);
    #  * small batches -> split into 2 tiles so the "parallel" axis can shard
    #    across v7x's two TensorCores (no-op on single-TC v5e/v6e);
    #  * large batches -> block_b-row tiles to amortize per-step pipeline
    #    overhead and reach HBM roofline (tiles are KBs, far under any
    #    scoped-VMEM limit, so no vmem_limit override needed).
    B8 = ((B + 7) // 8) * 8
    if B8 <= block_b:
        if B8 >= 16:
            TB = ((B8 // 2 + 7) // 8) * 8
            B_pad = 2 * TB
        else:
            TB, B_pad = B8, B8
    else:
        TB = block_b
        B_pad = ((B8 + TB - 1) // TB) * TB
    if B_pad != B:
        x = jnp.pad(x, ((0, B_pad - B), (0, 0)))

    cost = pl.CostEstimate(
        flops=2 * B_pad * (F * H + H * O),
        bytes_accessed=B_pad * (F + O) * 4 + (F * H + H * NP + H + O) * 4,
        transcendentals=0,
    )

    out = pl.pallas_call(
        _mlp_kernel,
        out_shape=jax.ShapeDtypeStruct((B_pad, O), x.dtype),
        grid=(B_pad // TB,),
        in_specs=[
            pl.BlockSpec((TB, F), lambda i: (i, 0)),    # streamed batch tile
            pl.BlockSpec((F, H), lambda i: (0, 0)),     # weights stay resident
            pl.BlockSpec((1, H), lambda i: (0, 0)),
            pl.BlockSpec((H, NP), lambda i: (0, 0)),
            pl.BlockSpec((1, O), lambda i: (0, 0)),
        ],
        out_specs=pl.BlockSpec((TB, O), lambda i: (i, 0)),   # narrow writeback
        compiler_params=pltpu.CompilerParams(
            # TODO(synk): if v7x profiling shows a serial single-core loop here,
            # switch this axis to pltpu.CORE_PARALLEL.
            dimension_semantics=("parallel",),
        ),
        cost_estimate=cost,
    )(x, w1_t, b1_r, w2_pad, b2_r)

    return out if B_pad == B else out[:B]


def _reference(x, w1, b1, w2, b2):
    h = jnp.maximum(x @ w1.T + b1, 0.0)
    return h @ w2.T + b2


if __name__ == "__main__":
    # Module shapes implied by the tutorial: n_feature=2, n_output=2; n_hidden=32.
    n_feature, n_hidden, n_output = 2, 32, 2
    batch = 256   # exercises a 2-step batch grid (TB=128)

    key = jax.random.PRNGKey(0)
    kx, kw1, kb1, kw2, kb2 = jax.random.split(key, 5)

    # Deterministic synthetic input mimicking the two Gaussian clusters at +/-2.
    x = jax.random.normal(kx, (batch, n_feature), dtype=jnp.float32)
    x = x + jnp.where((jnp.arange(batch) % 2 == 0)[:, None], 2.0, -2.0)

    # Deterministic parameter init (PyTorch Linear shapes: (out, in) weights).
    w1 = jax.random.normal(kw1, (n_hidden, n_feature), dtype=jnp.float32) * 0.1
    b1 = jax.random.normal(kb1, (n_hidden,), dtype=jnp.float32) * 0.1
    w2 = jax.random.normal(kw2, (n_output, n_hidden), dtype=jnp.float32) * 0.1
    b2 = jax.random.normal(kb2, (n_output,), dtype=jnp.float32) * 0.1

    # One-time layout prep outside the hot path; jit the forward on prepared params.
    params = prepare_params(w1, b1, w2, b2)
    fwd = jax.jit(functools.partial(net_forward))

    out = jax.block_until_ready(fwd(x, *params))

    ref = _reference(x, w1, b1, w2, b2)
    assert out.shape == (batch, n_output)
    assert jnp.allclose(out, ref, atol=1e-5, rtol=1e-5), "mismatch vs reference"

    print("KERNEL_OK")
</pallas_src>

<mosaic_0001>
module attributes {stable_mosaic.version = 11 : i64} {
  func.func @_mlp_kernel(%arg0: i32, %arg1: memref<128x2xf32, #tpu.memory_space<vmem>>, %arg2: memref<2x32xf32, #tpu.memory_space<vmem>>, %arg3: memref<1x32xf32, #tpu.memory_space<vmem>>, %arg4: memref<32x128xf32, #tpu.memory_space<vmem>>, %arg5: memref<1x2xf32, #tpu.memory_space<vmem>>, %arg6: memref<128x2xf32, #tpu.memory_space<vmem>>) attributes {dimension_semantics = [#tpu.dimension_semantics<parallel>], iteration_bounds = array<i64: 2>, scalar_prefetch = 0 : i64, scratch_operands = 0 : i64, tpu.core_type = #tpu.core_type<tc>, window_params = [{transform_indices = @transform_0, window_bounds = array<i64: 128, 2>}, {pipeline_mode = #tpu.pipeline_mode<synchronous>, transform_indices = @transform_1, window_bounds = array<i64: 2, 32>}, {pipeline_mode = #tpu.pipeline_mode<synchronous>, transform_indices = @transform_2, window_bounds = array<i64: 1, 32>}, {pipeline_mode = #tpu.pipeline_mode<synchronous>, transform_indices = @transform_3, window_bounds = array<i64: 32, 128>}, {pipeline_mode = #tpu.pipeline_mode<synchronous>, transform_indices = @transform_4, window_bounds = array<i64: 1, 2>}, {transform_indices = @transform_5, window_bounds = array<i64: 128, 2>}]} {
    %c0 = arith.constant 0 : index
    %c0_0 = arith.constant 0 : index
    %0 = vector.load %arg1[%c0, %c0_0] : memref<128x2xf32, #tpu.memory_space<vmem>>, vector<128x2xf32>
    %1 = vector.extract_strided_slice %0 {offsets = [0, 0], sizes = [128, 1], strides = [1, 1]} : vector<128x2xf32> to vector<128x1xf32>
    %c0_1 = arith.constant 0 : index
    %c0_2 = arith.constant 0 : index
    %2 = vector.load %arg2[%c0_1, %c0_2] : memref<2x32xf32, #tpu.memory_space<vmem>>, vector<1x32xf32>
    %3 = vector.broadcast %1 : vector<128x1xf32> to vector<128x32xf32>
    %4 = vector.broadcast %2 : vector<1x32xf32> to vector<128x32xf32>
    %5 = arith.mulf %3, %4 : vector<128x32xf32>
    %6 = vector.extract_strided_slice %0 {offsets = [0, 1], sizes = [128, 1], strides = [1, 1]} : vector<128x2xf32> to vector<128x1xf32>
    %c1 = arith.constant 1 : index
    %c0_3 = arith.constant 0 : index
    %7 = vector.load %arg2[%c1, %c0_3] : memref<2x32xf32, #tpu.memory_space<vmem>>, vector<1x32xf32>
    %8 = vector.broadcast %6 : vector<128x1xf32> to vector<128x32xf32>
    %9 = vector.broadcast %7 : vector<1x32xf32> to vector<128x32xf32>
    %10 = arith.mulf %8, %9 : vector<128x32xf32>
    %11 = arith.addf %5, %10 : vector<128x32xf32>
    %c0_4 = arith.constant 0 : index
    %c0_5 = arith.constant 0 : index
    %12 = vector.load %arg3[%c0_4, %c0_5] : memref<1x32xf32, #tpu.memory_space<vmem>>, vector<1x32xf32>
    %13 = vector.broadcast %12 : vector<1x32xf32> to vector<128x32xf32>
    %14 = arith.addf %11, %13 : vector<128x32xf32>
    %cst = arith.constant 0.000000e+00 : f32
    %15 = vector.broadcast %cst : f32 to vector<128x32xf32>
    %16 = arith.maximumf %14, %15 : vector<128x32xf32>
    %c0_6 = arith.constant 0 : index
    %c0_7 = arith.constant 0 : index
    %17 = vector.load %arg4[%c0_6, %c0_7] : memref<32x128xf32, #tpu.memory_space<vmem>>, vector<32x128xf32>
    %cst_8 = arith.constant dense<0.000000e+00> : vector<128x128xf32>
    %18 = tpu.matmul %16, %17, %cst_8 {dimension_numbers = #tpu.dot_dimension_numbers<[1], [0], [0], [1], [0, 0, 1, 1], [], []>} : vector<128x32xf32>, vector<32x128xf32>, vector<128x128xf32> -> vector<128x128xf32>
    %19 = vector.extract_strided_slice %18 {offsets = [0, 0], sizes = [128, 2], strides = [1, 1]} : vector<128x128xf32> to vector<128x2xf32>
    %c0_9 = arith.constant 0 : index
    %c0_10 = arith.constant 0 : index
    %20 = vector.load %arg5[%c0_9, %c0_10] : memref<1x2xf32, #tpu.memory_space<vmem>>, vector<1x2xf32>
    %21 = vector.broadcast %20 : vector<1x2xf32> to vector<128x2xf32>
    %22 = arith.addf %19, %21 : vector<128x2xf32>
    %c0_11 = arith.constant 0 : index
    %c0_12 = arith.constant 0 : index
    %23 = vector.load %arg6[%c0_11, %c0_12] : memref<128x2xf32, #tpu.memory_space<vmem>>, vector<128x2xf32>
    tpu.vector_store %arg6[%c0_11, %c0_12], %22 {strides = array<i32>} : memref<128x2xf32, #tpu.memory_space<vmem>>, vector<128x2xf32>,
    return
  }
  func.func @transform_0(%arg0: i32) -> (i32, i32) {
    %c0_i32 = arith.constant 0 : i32
    %c0_i32_0 = arith.constant 0 : i32
    return %arg0, %c0_i32 : i32, i32
  }
  func.func @transform_1(%arg0: i32) -> (i32, i32) {
    %c0_i32 = arith.constant 0 : i32
    %c0_i32_0 = arith.constant 0 : i32
    %c0_i32_1 = arith.constant 0 : i32
    return %c0_i32, %c0_i32_0 : i32, i32
  }
  func.func @transform_2(%arg0: i32) -> (i32, i32) {
    %c0_i32 = arith.constant 0 : i32
    %c0_i32_0 = arith.constant 0 : i32
    %c0_i32_1 = arith.constant 0 : i32
    return %c0_i32, %c0_i32_0 : i32, i32
  }
  func.func @transform_3(%arg0: i32) -> (i32, i32) {
    %c0_i32 = arith.constant 0 : i32
    %c0_i32_0 = arith.constant 0 : i32
    %c0_i32_1 = arith.constant 0 : i32
    return %c0_i32, %c0_i32_0 : i32, i32
  }
  func.func @transform_4(%arg0: i32) -> (i32, i32) {
    %c0_i32 = arith.constant 0 : i32
    %c0_i32_0 = arith.constant 0 : i32
    %c0_i32_1 = arith.constant 0 : i32
    return %c0_i32, %c0_i32_0 : i32, i32
  }
  func.func @transform_5(%arg0: i32) -> (i32, i32) {
    %c0_i32 = arith.constant 0 : i32
    %c0_i32_0 = arith.constant 0 : i32
    return %arg0, %c0_i32 : i32, i32
  }
}

</mosaic_0001>

<bundles_post_ra>
// kernel: net_forward.1
= control target key start
LH: loop header
LB: loop body
LE: loop exit
PB: predicated region body
PF: predicated region fallthrough
CT: control target
= control target key end

     0   :  { %s941_s18 = smov 0   ;;  %s1134_s0 = inlined_call_operand.vmem [shape: f32[256,2], index: 0, kind: input, shape index: {}]   ;;  %s1135_s1 = inlined_call_operand.vmem [shape: f32[2,32], index: 1, kind: input, shape index: {}]   ;;  %s1136_s2 = inlined_call_operand.vmem [shape: f32[1,32], index: 2, kind: input, shape index: {}]   ;;  %s1137_s3 = inlined_call_operand.vmem [shape: f32[32,128], index: 3, kind: input, shape index: {}]   ;;  %s1138_s4 = inlined_call_operand.vmem [shape: f32[1,2], index: 4, kind: input, shape index: {}]   ;;  %s1139_s5 = inlined_call_operand.vmem [shape: f32[256,2], index: 5, kind: output, shape index: {}]  }
   0x1 LB: > { %s779_s19 = sadd.s32 4294967295, %s907_s18   ;;  %p783_p0 = scmp.ge.s32.totalorder %s907_s18, 1  ;;  %s907_s18 = sphi %s941_s18, %s15_s18  }
   0x2   : > { %p188_p1 = scmp.lt.s32.totalorder %s907_s18, 3 }
   0x4   : > { %p189_p2 = pnand %p783_p0, %p188_p1 }
   0x5   : > { %s784_s20 = sshll.u32 (!%p189_p2), %s779_s19, 4  ;;  %v909_v0 = vmov (!%p189_p2), 1   ;;  %v910_v1 = vmov (!%p189_p2), 0   ;;  %v485_v7 = vld [vmem:[%s1137_s3] sm:$0xff] (!%p189_p2)  ;;  %v486_v8 = vld [vmem:[%s1137_s3 + $0x8] sm:$0xff] (!%p189_p2)  ;;  %v487_v11 = vld [vmem:[%s1137_s3 + $0x10] sm:$0xff] (!%p189_p2) }
   0x6   : > { %192 = sbr.rel (%p189_p2) target bundleno = 455 (0x1c7), region = 40  ;;  %885 = vset.pattern.permute.xlu1 (!%p189_p2), %v909_v0  ;;  %884 = vset.pattern.permute.xlu0 (!%p189_p2), %v910_v1  ;;  %p217_p3 = scmp.lt.s32.totalorder (!%p189_p2), %s784_s20, 31  ;;  %v862_v9 = vpack.c.bf16 (!%p189_p2), %v486_v8, %v485_v7  ;;  %v488_v12 = vld [vmem:[%s1137_s3 + $0x18] sm:$0xff] (!%p189_p2)  ;;  %v1007_v24 = vld [vmem:[%s1135_s1 + $0x1] ss:$0 sm:$0xff] (!%p189_p2)  ;;  %vm489_vm0 = vcmask (!%p189_p2), 261120  }
   0x7   : > { %v866_v14 = vpack.c.bf16 (!%p189_p2), %v488_v12, %v487_v11  ;;  %v1012_v25 = vld [vmem:[%s1135_s1] ss:$0 sm:$0xff] (!%p189_p2)  ;;  %vm706_vm1 = vcmask (!%p189_p2), 15360  }
   0x8   : > { %870 = vmatprep.subr.bf16.mxu1 (!%p189_p2), %v862_v9  ;;  %863 = vmatprep.subr.bf16.mxu0 (!%p189_p2), %v862_v9  ;;  %v1019_v30 = vld [vmem:[%s1136_s2] ss:$0 sm:$0xff] (!%p189_p2) }
   0x9   : > { %872 = vmatpush3.bf16.msra.mxu1 (!%p189_p2), %v862_v9  ;;  %865 = vmatpush3.bf16.msra.mxu0 (!%p189_p2), %v862_v9 }
   0xa   : > { %871 = vmatprep.subr.bf16.mxu1 (!%p189_p2), %v866_v14  ;;  %867 = vmatprep.subr.bf16.mxu0 (!%p189_p2), %v866_v14 }
   0xd   : > { %s1141_s20 = smov (!%p217_p3, %s784_s20), 31  ;;  %873 = vmatpush3.bf16.msra.mxu1 %v866_v14  ;;  %869 = vmatpush3.bf16.msra.mxu0 %v866_v14 }
   0xe   : > { %s785_s21 = sshll.u32 %s1141_s20, 3 }
   0xf   : > { %s959_s24 = scalar_lea.vmem %s1134_s0, %s785_s21  ;;  %s1097_s19 = scalar_lea.vmem %s1139_s5, %s785_s21 }
  0x10   : > { %v228_v2 = vld [vmem:[%s959_s24] sm:$0xff]  ;;  %v229_v4 = vld [vmem:[%s959_s24 + $0x8] sm:$0xff]  ;;  %v238_v6 = vld [vmem:[%s959_s24 + $0x50] sm:$0xff] }
  0x11   : > { %347 = vperm.xlu1 %885, %v228_v2   ;;  %247 = vperm.xlu0 %884, %v228_v2   ;;  %v236_v3 = vld [vmem:[%s959_s24 + $0x40] sm:$0xff]  ;;  %v237_v5 = vld [vmem:[%s959_s24 + $0x48] sm:$0xff]  ;;  %v231_v10 = vld [vmem:[%s959_s24 + $0x18] sm:$0xff] }
  0x12   : > { %v230_v13 = vld [vmem:[%s959_s24 + $0x10] sm:$0xff]  ;;  %v240_v15 = vld [vmem:[%s959_s24 + $0x60] sm:$0xff]  ;;  %v233_v16 = vld [vmem:[%s959_s24 + $0x28] sm:$0xff] }
  0x13   : > { %v242_v17 = vld [vmem:[%s959_s24 + $0x70] sm:$0xff]  ;;  %v235_v18 = vld [vmem:[%s959_s24 + $0x38] sm:$0xff]  ;;  %v232_v20 = vld [vmem:[%s959_s24 + $0x20] sm:$0xff] }
  0x14   : > { %v239_v19 = vld [vmem:[%s959_s24 + $0x58] sm:$0xff]  ;;  %v241_v21 = vld [vmem:[%s959_s24 + $0x68] sm:$0xff]  ;;  %v234_v22 = vld [vmem:[%s959_s24 + $0x30] sm:$0xff] }
  0x15   : > { %379 = vperm.xlu1 %885, %v236_v3   ;;  %287 = vperm.xlu0 %884, %v236_v3   ;;  %v243_v23 = vld [vmem:[%s959_s24 + $0x78] sm:$0xff] }
  0x19   : > { %886 = vset.pattern.permute.xlu1 %v910_v1  ;;  %252 = vperm.xlu0 %884, %v229_v4  }
  0x1a   : > { %292 = vperm.xlu1 %886, %v237_v5  }
  0x1d   : > { %297 = vperm.xlu0 %884, %v238_v6  }
  0x1e   : > { %887 = vset.pattern.permute.xlu1 %v909_v0 }
  0x1f   : > { %383 = vperm.xlu1 %887, %v237_v5  }
  0x21   : > { %262 = vperm.xlu0 %884, %v231_v10  }
  0x23   : > { %888 = vset.pattern.permute.xlu1 %v910_v1 }
  0x24   : > { %257 = vperm.xlu1 %888, %v230_v13  }
  0x25   : > { %307 = vperm.xlu0 %884, %v240_v15  }
  0x28   : > { %889 = vset.pattern.permute.xlu1 %v909_v0 }
  0x29   : > { %355 = vperm.xlu1 %889, %v230_v13   ;;  %272 = vperm.xlu0 %884, %v233_v16  }
  0x2d   : > { %387 = vperm.xlu1 %889, %v238_v6   ;;  %317 = vperm.xlu0 %884, %v242_v17  }
  0x31   : > { %890 = vset.pattern.permute.xlu1 %v910_v1  ;;  %282 = vperm.xlu0 %884, %v235_v18  }
  0x32   : > { %302 = vperm.xlu1 %890, %v239_v19  }
  0x35   : > { %898 = vset.pattern.permute.xlu0 %v909_v0 }
  0x36   : > { %891 = vset.pattern.permute.xlu1 %v909_v0  ;;  %351 = vperm.xlu0 %898, %v229_v4  }
  0x37   : > { %391 = vperm.xlu1 %891, %v239_v19  }
  0x3a   : > { %359 = vperm.xlu0 %898, %v231_v10  }
  0x3b   : > { %892 = vset.pattern.permute.xlu1 %v910_v1 }
  0x3c   : > { %267 = vperm.xlu1 %892, %v232_v20  }
  0x3e   : > { %367 = vperm.xlu0 %898, %v233_v16  }
  0x40   : > { %893 = vset.pattern.permute.xlu1 %v909_v0 }
  0x41   : > { %363 = vperm.xlu1 %893, %v232_v20  }
  0x42   : > { %375 = vperm.xlu0 %898, %v235_v18  }
  0x45   : > { %395 = vperm.xlu1 %893, %v240_v15  }
  0x49   : > { %894 = vset.pattern.permute.xlu1 %v910_v1 }
  0x4a   : > { %312 = vperm.xlu1 %894, %v241_v21  }
  0x4e   : > { %895 = vset.pattern.permute.xlu1 %v909_v0 }
  0x4f   : > { %399 = vperm.xlu1 %895, %v241_v21  }
  0x53   : > { %896 = vset.pattern.permute.xlu1 %v910_v1 }
  0x54   : > { %277 = vperm.xlu1 %896, %v234_v22  }
  0x58   : > { %897 = vset.pattern.permute.xlu1 %v909_v0 }
  0x59   : > { %371 = vperm.xlu1 %897, %v234_v22  }
  0x5d   : > { %403 = vperm.xlu1 %897, %v242_v17  }
  0x61   : > { %899 = vset.pattern.permute.xlu1 %v910_v1 }
  0x62   : > { %322 = vperm.xlu1 %899, %v243_v23  }
  0x66   : > { %900 = vset.pattern.permute.xlu1 %v909_v0 }
  0x67   : > { %407 = vperm.xlu1 %900, %v243_v23  }
  0x90   : > { %v348_v26 = vpop.permute.xlu1 %347  ;;  %v248_v27 = vpop.permute.xlu0 %247 }
  0x91   : > { %v414_v28 = vmul.f32 %v1007_v24, %v348_v26  ;;  %v329_v29 = vmul.f32 %v1012_v25, %v248_v27 }
  0x93   : > { %v430_v31 = vadd.f32 %v414_v28, %v329_v29 }
  0x94   : > { %v380_v32 = vpop.permute.xlu1 %379  ;;  %v288_v33 = vpop.permute.xlu0 %287 }
  0x95   : > { %v422_v34 = vmul.f32 %v1007_v24, %v380_v32  ;;  %v337_v35 = vmul.f32 %v1012_v25, %v288_v33  ;;  %v453_v36 = vadd.f32 %v1019_v30, %v430_v31 }
  0x97   : > { %v438_v37 = vadd.f32 %v422_v34, %v337_v35  ;;  %v469_v38 = vmax.f32 %v453_v36, 0.0 }
  0x98   : > { %v253_v39 = vpop.permute.xlu0 %252 }
  0x99   : > { %v293_v40 = vpop.permute.xlu1 %292  ;;  %838 = vmatprep.mubr.msk.f32.mxu0 %vm489_vm0, %v469_v38  ;;  %v461_v41 = vadd.f32 %v1019_v30, %v438_v37  ;;  %v330_v2 = vmul.f32 %v1012_v25, %v253_v39 }
  0x9a   : > { %v338_v45 = vmul.f32 %v1012_v25, %v293_v40 }
  0x9b   : > { %v477_v42 = vmax.f32 %v461_v41, 0.0 }
  0x9c   : > { %v298_v43 = vpop.permute.xlu0 %297 }
  0x9d   : > { %850 = vmatprep.mubr.msk.f32.mxu1 %vm489_vm0, %v477_v42  ;;  %v339_v55 = vmul.f32 %v1012_v25, %v298_v43 }
  0x9e   : > { %v384_v44 = vpop.permute.xlu1 %383 }
  0x9f   : > { %v423_v46 = vmul.f32 %v1007_v24, %v384_v44 }
  0xa0   : > { %v263_v47 = vpop.permute.xlu0 %262 }
  0xa1   : > { %v439_v48 = vadd.f32 %v423_v46, %v338_v45  ;;  %v332_v13 = vmul.f32 %v1012_v25, %v263_v47 }
  0xa3   : > { %v462_v49 = vadd.f32 %v1019_v30, %v439_v48  ;;  %v258_v50 = vpop.permute.xlu1 %257 }
  0xa4   : > { %v308_v51 = vpop.permute.xlu0 %307  ;;  %v331_v0 = vmul.f32 %v1012_v25, %v258_v50 }
  0xa5   : > { %v478_v52 = vmax.f32 %v462_v49, 0.0  ;;  %v341_v37 = vmul.f32 %v1012_v25, %v308_v51 }
  0xa7   : > { %851 = vmatmul.mubr.msk.f32.vlgmr.msra.gmra.mrb[0].mxu1 %vm489_vm0, %v478_v52 }
  0xa8   : > { %v356_v53 = vpop.permute.xlu1 %355  ;;  %v273_v54 = vpop.permute.xlu0 %272 }
  0xa9   : > { %v416_v61 = vmul.f32 %v1007_v24, %v356_v53  ;;  %v334_v23 = vmul.f32 %v1012_v25, %v273_v54 }
  0xab   : > { %v432_v3 = vadd.f32 %v416_v61, %v331_v0 }
  0xac   : > { %v388_v56 = vpop.permute.xlu1 %387  ;;  %v1032_v57 = vpop.permute.xlu0 %317 }
  0xad   : > { %v424_v58 = vmul.f32 %v1007_v24, %v388_v56  ;;  %v455_v10 = vadd.f32 %v1019_v30, %v432_v3 }
  0xaf   : > { %v440_v59 = vadd.f32 %v424_v58, %v339_v55  ;;  %v471_v20 = vmax.f32 %v455_v10, 0.0 }
  0xb0   : > { %v1035_v60 = vpop.permute.xlu0 %282 }
  0xb1   : > { %v463_v62 = vadd.f32 %v1019_v30, %v440_v59  ;;  %v303_v63 = vpop.permute.xlu1 %302  ;;  %v336_v55 = vmul.f32 %v1012_v25, %v1035_v60 }
  0xb2   : > { %v340_v7 = vmul.f32 %v1012_v25, %v303_v63 }
  0xb3   : > { %v479_v1 = vmax.f32 %v463_v62, 0.0 }
  0xb5   : > { %853 = vmatprep.mubr.msk.f32.mxu1 %vm489_vm0, %v479_v1  ;;  %v352_v4 = vpop.permute.xlu0 %351  ;;  %v343_v1 = vmul.f32 %v1012_v25, %v1032_v57 }
  0xb6   : > { %v415_v5 = vmul.f32 %v1007_v24, %v352_v4  ;;  %v392_v6 = vpop.permute.xlu1 %391 }
  0xb7   : > { %v425_v8 = vmul.f32 %v1007_v24, %v392_v6 }
  0xb8   : > { %v431_v9 = vadd.f32 %v415_v5, %v330_v2 }
  0xb9   : > { %v441_v11 = vadd.f32 %v425_v8, %v340_v7  ;;  %v360_v12 = vpop.permute.xlu0 %359 }
  0xba   : > { %v454_v14 = vadd.f32 %v1019_v30, %v431_v9  ;;  %v417_v15 = vmul.f32 %v1007_v24, %v360_v12 }
  0xbb   : > { %v464_v16 = vadd.f32 %v1019_v30, %v441_v11  ;;  %v268_v17 = vpop.permute.xlu1 %267 }
  0xbc   : > { %v470_v18 = vmax.f32 %v454_v14, 0.0  ;;  %v433_v19 = vadd.f32 %v417_v15, %v332_v13  ;;  %v333_v32 = vmul.f32 %v1012_v25, %v268_v17  ;;  %v807_v14 = vld [vmem:[%s1138_s4] ss:$0 sm:$0xff] }
  0xbd   : > { %v480_v21 = vmax.f32 %v464_v16, 0.0  ;;  %v368_v22 = vpop.permute.xlu0 %367 }
  0xbe   : > { %v456_v26 = vadd.f32 %v1019_v30, %v433_v19  ;;  %v419_v27 = vmul.f32 %v1007_v24, %v368_v22  ;;  %839 = vmatmul.mubr.msk.f32.vlgmr.msra.gmra.mrb[0].mxu0 %vm489_vm0, %v470_v18 }
  0xbf   : > { %841 = vmatprep.mubr.msk.f32.mxu0 %vm489_vm0, %v471_v20  ;;  %854 = vmatmul.mubr.msk.f32.gmra.mrb[2].mxu1 %vm489_vm0, %v480_v21 }
  0xc0   : > { %v472_v28 = vmax.f32 %v456_v26, 0.0  ;;  %v435_v29 = vadd.f32 %v419_v27, %v334_v23  ;;  %v364_v31 = vpop.permute.xlu1 %363 }
  0xc1   : > { %v418_v33 = vmul.f32 %v1007_v24, %v364_v31  ;;  %v376_v49 = vpop.permute.xlu0 %375 }
  0xc2   : > { %842 = vmatmul.mubr.msk.f32.gmra.mrb[2].mxu0 %vm489_vm0, %v472_v28  ;;  %v458_v35 = vadd.f32 %v1019_v30, %v435_v29  ;;  %v421_v53 = vmul.f32 %v1007_v24, %v376_v49 }
  0xc3   : > { %v434_v34 = vadd.f32 %v418_v33, %v333_v32 }
  0xc4   : > { %v396_v36 = vpop.permute.xlu1 %395  ;;  %v474_v42 = vmax.f32 %v458_v35, 0.0  ;;  %v437_v56 = vadd.f32 %v421_v53, %v336_v55 }
  0xc5   : > { %v457_v38 = vadd.f32 %v1019_v30, %v434_v34  ;;  %v426_v39 = vmul.f32 %v1007_v24, %v396_v36 }
  0xc6   : > { %v460_v63 = vadd.f32 %v1019_v30, %v437_v56 }
  0xc7   : > { %v473_v40 = vmax.f32 %v457_v38, 0.0  ;;  %v442_v41 = vadd.f32 %v426_v39, %v341_v37 }
  0xc8   : > { %v476_v5 = vmax.f32 %v460_v63, 0.0 }
  0xc9   : > { %v465_v43 = vadd.f32 %v1019_v30, %v442_v41  ;;  %v313_v44 = vpop.permute.xlu1 %312  ;;  %844 = vmatprep.mubr.msk.f32.mxu0 %vm489_vm0, %v473_v40 }
  0xca   : > { %845 = vmatmul.mubr.msk.f32.gmra.mrb[4].mxu0 %vm489_vm0, %v474_v42  ;;  %v342_v47 = vmul.f32 %v1012_v25, %v313_v44 }
  0xcb   : > { %v481_v45 = vmax.f32 %v465_v43, 0.0 }
  0xcd   : > { %856 = vmatprep.mubr.msk.f32.mxu1 %vm489_vm0, %v481_v45 }
  0xce   : > { %v400_v46 = vpop.permute.xlu1 %399 }
  0xcf   : > { %v427_v48 = vmul.f32 %v1007_v24, %v400_v46 }
  0xd1   : > { %v443_v50 = vadd.f32 %v427_v48, %v342_v47 }
  0xd3   : > { %v466_v51 = vadd.f32 %v1019_v30, %v443_v50  ;;  %v278_v52 = vpop.permute.xlu1 %277 }
  0xd4   : > { %v335_v59 = vmul.f32 %v1012_v25, %v278_v52 }
  0xd5   : > { %v482_v54 = vmax.f32 %v466_v51, 0.0 }
  0xd7   : > { %857 = vmatmul.mubr.msk.f32.gmra.mrb[4].mxu1 %vm489_vm0, %v482_v54 }
  0xd8   : > { %v372_v58 = vpop.permute.xlu1 %371 }
  0xd9   : > { %v420_v61 = vmul.f32 %v1007_v24, %v372_v58 }
  0xdb   : > { %v436_v62 = vadd.f32 %v420_v61, %v335_v59 }
  0xdc   : > { %v404_v0 = vpop.permute.xlu1 %403 }
  0xdd   : > { %v459_v2 = vadd.f32 %v1019_v30, %v436_v62  ;;  %v428_v3 = vmul.f32 %v1007_v24, %v404_v0 }
  0xdf   : > { %v475_v60 = vmax.f32 %v459_v2, 0.0  ;;  %v444_v4 = vadd.f32 %v428_v3, %v343_v1 }
  0xe1   : > { %v467_v6 = vadd.f32 %v1019_v30, %v444_v4  ;;  %v323_v7 = vpop.permute.xlu1 %322  ;;  %847 = vmatprep.mubr.msk.f32.mxu0 %vm489_vm0, %v475_v60 }
  0xe2   : > { %848 = vmatmul.mubr.msk.f32.gmra.mrb[6].mxu0 %vm489_vm0, %v476_v5  ;;  %v344_v57 = vmul.f32 %v1012_v25, %v323_v7 }
  0xe3   : > { %v483_v8 = vmax.f32 %v467_v6, 0.0 }
  0xe5   : > { %859 = vmatprep.mubr.msk.f32.mxu1 %vm489_vm0, %v483_v8 }
  0xe6   : > { %v408_v9 = vpop.permute.xlu1 %407 }
  0xe7   : > { %v429_v10 = vmul.f32 %v1007_v24, %v408_v9 }
  0xe9   : > { %v445_v11 = vadd.f32 %v429_v10, %v344_v57 }
  0xeb   : > { %v468_v12 = vadd.f32 %v1019_v30, %v445_v11 }
  0xed   : > { %v484_v13 = vmax.f32 %v468_v12, 0.0 }
  0xef   : > { %860 = vmatmul.mubr.msk.f32.gmra.mrb[6].mxu1 %vm489_vm0, %v484_v13 }
 0x17a   : > { %v852_v24 = vpop.f32.mrb[0].mxu1 }
 0x17b   : > { %v699_v25 = vadd.f32 %v852_v24, %v807_v14  ;;  %v644_v30 = vpop.f32.mrb[1].mxu1 }
 0x17c   : > { %v698_v15 = vadd.f32 %v807_v14, %v644_v30 }
 0x17d   : > { %716 = vst.msk [vmem:[%s1097_s19 + $0x48] sm:$0xff] %vm706_vm1, %v699_v25 }
 0x17e   : > { %715 = vst.msk [vmem:[%s1097_s19 + $0x40] sm:$0xff] %vm706_vm1, %v698_v15 }
 0x191   : > { %v840_v16 = vpop.f32.mrb[0].mxu0 }
 0x192   : > { %v691_v17 = vadd.f32 %v840_v16, %v807_v14  ;;  %v604_v18 = vpop.f32.mrb[1].mxu0  ;;  %v855_v19 = vpop.f32.mrb[2].mxu1 }
 0x193   : > { %v690_v20 = vadd.f32 %v807_v14, %v604_v18  ;;  %v701_v21 = vadd.f32 %v855_v19, %v807_v14  ;;  %v654_v22 = vpop.f32.mrb[3].mxu1 }
 0x194   : > { %708 = vst.msk [vmem:[%s1097_s19 + $0x8] sm:$0xff] %vm706_vm1, %v691_v17  ;;  %v700_v23 = vadd.f32 %v807_v14, %v654_v22 }
 0x195   : > { %707 = vst.msk [vmem:[%s1097_s19] sm:$0xff] %vm706_vm1, %v690_v20  ;;  %718 = vst.msk [vmem:[%s1097_s19 + $0x58] sm:$0xff] %vm706_vm1, %v701_v21  ;;  %v843_v26 = vpop.f32.mrb[2].mxu0 }
 0x196   : > { %717 = vst.msk [vmem:[%s1097_s19 + $0x50] sm:$0xff] %vm706_vm1, %v700_v23  ;;  %v693_v27 = vadd.f32 %v843_v26, %v807_v14  ;;  %v614_v28 = vpop.f32.mrb[3].mxu0 }
 0x197   : > { %v692_v29 = vadd.f32 %v807_v14, %v614_v28 }
 0x198   : > { %710 = vst.msk [vmem:[%s1097_s19 + $0x18] sm:$0xff] %vm706_vm1, %v693_v27 }
 0x199   : > { %709 = vst.msk [vmem:[%s1097_s19 + $0x10] sm:$0xff] %vm706_vm1, %v692_v29 }
 0x19d   : > { %v846_v31 = vpop.f32.mrb[4].mxu0 }
 0x19e   : > { %v695_v32 = vadd.f32 %v846_v31, %v807_v14  ;;  %v624_v33 = vpop.f32.mrb[5].mxu0 }
 0x19f   : > { %v694_v34 = vadd.f32 %v807_v14, %v624_v33 }
 0x1a0   : > { %712 = vst.msk [vmem:[%s1097_s19 + $0x28] sm:$0xff] %vm706_vm1, %v695_v32 }
 0x1a1   : > { %711 = vst.msk [vmem:[%s1097_s19 + $0x20] sm:$0xff] %vm706_vm1, %v694_v34 }
 0x1aa   : > { %v858_v35 = vpop.f32.mrb[4].mxu1 }
 0x1ab   : > { %v703_v36 = vadd.f32 %v858_v35, %v807_v14  ;;  %v664_v37 = vpop.f32.mrb[5].mxu1 }
 0x1ac   : > { %v702_v38 = vadd.f32 %v807_v14, %v664_v37 }
 0x1ad   : > { %720 = vst.msk [vmem:[%s1097_s19 + $0x68] sm:$0xff] %vm706_vm1, %v703_v36 }
 0x1ae   : > { %719 = vst.msk [vmem:[%s1097_s19 + $0x60] sm:$0xff] %vm706_vm1, %v702_v38 }
 0x1b5   : > { %v849_v39 = vpop.f32.mrb[6].mxu0 }
 0x1b6   : > { %v697_v40 = vadd.f32 %v849_v39, %v807_v14  ;;  %v634_v41 = vpop.f32.mrb[7].mxu0 }
 0x1b7   : > { %v696_v42 = vadd.f32 %v807_v14, %v634_v41 }
 0x1b8   : > { %714 = vst.msk [vmem:[%s1097_s19 + $0x38] sm:$0xff] %vm706_vm1, %v697_v40 }
 0x1b9   : > { %713 = vst.msk [vmem:[%s1097_s19 + $0x30] sm:$0xff] %vm706_vm1, %v696_v42 }
 0x1c2   : > { %v861_v43 = vpop.f32.mrb[6].mxu1 }
 0x1c3   : > { %v705_v44 = vadd.f32 %v861_v43, %v807_v14  ;;  %v674_v45 = vpop.f32.mrb[7].mxu1 }
 0x1c4   : > { %v704_v46 = vadd.f32 %v807_v14, %v674_v45 }
 0x1c5   : > { %722 = vst.msk [vmem:[%s1097_s19 + $0x78] sm:$0xff] %vm706_vm1, %v705_v44 }
 0x1c6   : > { %721 = vst.msk [vmem:[%s1097_s19 + $0x70] sm:$0xff] %vm706_vm1, %v704_v46 }
 0x1c7 PF: > { %s15_s18 = sadd.s32 1, %s907_s18  }
 0x1c8   : > { %p12_p4 = scmp.ge.s32.totalorder %s15_s18, 4  }
 0x1ca   :  { %14 = sbr.rel (!%p12_p4) target bundleno = 1 (0x1), region = 70 }

</bundles_post_ra>
